<compile_context>
chip_gen: v5e
topology: v5e:2x2
jax: 0.10.0
libtpu: 0.0.40
codegen_flags: <defaults>
</compile_context>

<pallas_src>
import functools

import jax
import jax.numpy as jnp
from jax import lax
from jax.experimental import pallas as pl
from jax.experimental.pallas import tpu as pltpu


def _cos_classifier_kernel(scale_ref, x_ref, wT_ref, wsq_ref, o_ref, acc_ref, xsq_ref):
    # scale_ref: (1,)      SMEM   -- Scalar parameter
    # x_ref    : (TB, TK)  VMEM   -- inputs tile
    # wT_ref   : (TK, TC)  VMEM   -- proto^T tile (class axis on lanes)
    # wsq_ref  : (1, TC)   VMEM   -- precomputed sum(proto^2) per class
    # o_ref    : (TB, TC)  VMEM   -- output tile (resident across the K axis)
    # acc_ref  : (TB, TC)  VMEM scratch f32 accumulator
    # xsq_ref  : (TB, 1)   VMEM scratch f32 sum-of-squares of x rows
    k = pl.program_id(2)

    @pl.when(k == 0)
    def _():
        acc_ref[...] = jnp.zeros_like(acc_ref)
        xsq_ref[...] = jnp.zeros_like(xsq_ref)

    x = x_ref[...]
    # MXU: (TB, TK) @ (TK, TC) -> (TB, TC), contraction on last/first dims (no relayout).
    acc_ref[...] += jnp.dot(x, wT_ref[...], preferred_element_type=jnp.float32)
    # Cheap VPU/XLU side-work: accumulate ||x_b||^2 across the D tiles.
    xsq_ref[...] += jnp.sum(x * x, axis=-1, keepdims=True)

    @pl.when(k == pl.num_programs(2) - 1)
    def _():
        eps = jnp.float32(1e-8)
        # torch: denom = max(sqrt(w1 * w2), eps)  ->  1/denom = rsqrt(max(w1*w2, eps^2))
        denom_sq = jnp.maximum(xsq_ref[...] * wsq_ref[...], eps * eps)
        scale = scale_ref[0] * jnp.float32(10.0)
        # Single fused store: matmul acc * rsqrt (EUP) * folded scale.
        o_ref[...] = (acc_ref[...] * lax.rsqrt(denom_sq) * scale).astype(o_ref.dtype)


def _round_up(x: int, m: int) -> int:
    return ((x + m - 1) // m) * m


@functools.partial(jax.jit, static_argnames=("with_proto", "tb", "tc", "tk"))
def cos_classifier(inputs, proto, scalar, with_proto=False, *, tb=256, tc=512, tk=512):
    """Pallas implementation of CosClassifier.forward.

    inputs: (B, D) float32
    proto : (C, D) float32
    scalar: (1,)   float32
    """
    B, D = inputs.shape
    C, D2 = proto.shape
    assert D == D2, "feature dims must match"

    x = inputs.astype(jnp.float32)
    w = proto.astype(jnp.float32)

    # Tile sizes (clamped to padded problem dims) and padded array extents.
    TB = min(tb, _round_up(B, 8))
    TC = min(tc, _round_up(C, 128))   # class axis on lanes -> lane-dense output
    TK = min(tk, _round_up(D, 128))
    B_pad = _round_up(B, TB)
    C_pad = _round_up(C, TC)
    D_pad = _round_up(D, TK)

    # Zero padding is exact: padded rows/cols contribute 0 to dots and 0 to norms,
    # so their (sliced-off) outputs are 0 via the eps clamp (no NaN/Inf).
    x_p = jnp.pad(x, ((0, B_pad - B), (0, D_pad - D)))
    wT_p = jnp.pad(w.T, ((0, D_pad - D), (0, C_pad - C)))                      # (D_pad, C_pad)
    wsq_p = jnp.pad(jnp.sum(w * w, axis=-1)[None, :], ((0, 0), (0, C_pad - C)))  # (1, C_pad)

    grid = (B_pad // TB, C_pad // TC, D_pad // TK)

    # NOTE: for demo-sized problems a plain XLA fusion would be at least as fast;
    # the Pallas path pays off once B*C*D is MXU/HBM-bound.
    # TODO(synk): optional bf16 matmul path (cast x/wT tiles to bf16, keep f32 acc)
    # for large shapes on v6e/v7x.
    out = pl.pallas_call(
        _cos_classifier_kernel,
        out_shape=jax.ShapeDtypeStruct((B_pad, C_pad), jnp.float32),
        grid_spec=pltpu.PrefetchScalarGridSpec(
            num_scalar_prefetch=0,
            grid=grid,
            in_specs=[
                pl.BlockSpec(memory_space=pltpu.MemorySpace.SMEM),   # Scalar (1,)
                pl.BlockSpec((TB, TK), lambda i, j, k: (i, k)),      # inputs tile
                pl.BlockSpec((TK, TC), lambda i, j, k: (k, j)),      # proto^T tile
                pl.BlockSpec((1, TC), lambda i, j, k: (0, j)),       # proto sum-of-squares
            ],
            out_specs=pl.BlockSpec((TB, TC), lambda i, j, k: (i, j)),
            scratch_shapes=[
                pltpu.VMEM((TB, TC), jnp.float32),   # matmul accumulator
                pltpu.VMEM((TB, 1), jnp.float32),    # ||x||^2 accumulator
            ],
        ),
        compiler_params=pltpu.CompilerParams(
            dimension_semantics=("parallel", "parallel", "arbitrary"),
            vmem_limit_bytes=64 * 1024 * 1024,   # fits v7x's 64 MiB; usage is ~a few MiB
        ),
    )(scalar.astype(jnp.float32), x_p, wT_p, wsq_p)

    sim = out[:B, :C]
    if with_proto:
        # .detach().clone() of the prototype -> plain copy of the parameter array.
        return sim, jnp.array(proto)
    return sim


def _reference(inputs, proto, scalar):
    # Exact torch.cosine_similarity semantics: clamp the *product* of norms at eps.
    eps = jnp.float32(1e-8)
    w12 = inputs @ proto.T
    w1 = jnp.sum(inputs * inputs, axis=-1, keepdims=True)
    w2 = jnp.sum(proto * proto, axis=-1, keepdims=True)
    denom = jnp.sqrt(jnp.maximum(w1 * w2.T, eps * eps))
    return (w12 / denom) * scalar[0] * 10.0


if __name__ == "__main__":
    # Small shapes consistent with the module: batch=8, feature_dim=32, class_num=16.
    B, D, C = 8, 32, 16

    key = jax.random.PRNGKey(0)
    k_x, k_p = jax.random.split(key)

    inputs = jax.random.normal(k_x, (B, D), dtype=jnp.float32)
    proto = jax.random.uniform(k_p, (C, D), dtype=jnp.float32)   # torch.rand -> U[0,1)
    scalar = jnp.array([1.0], dtype=jnp.float32)

    sim = jax.block_until_ready(cos_classifier(inputs, proto, scalar))
    ref = _reference(inputs, proto, scalar)
    assert sim.shape == (B, C)
    assert jnp.allclose(sim, ref, atol=1e-4, rtol=1e-4), "mismatch vs reference"

    # Exercise with_proto=True and a multi-step D reduction (tk=128 -> 2 K tiles).
    B2, D2, C2 = 16, 256, 48
    k_x2, k_p2 = jax.random.split(jax.random.PRNGKey(1))
    x2 = jax.random.normal(k_x2, (B2, D2), dtype=jnp.float32)
    p2 = jax.random.uniform(k_p2, (C2, D2), dtype=jnp.float32)
    sim2, proto_out = cos_classifier(x2, p2, scalar, with_proto=True, tk=128)
    sim2 = jax.block_until_ready(sim2)
    ref2 = _reference(x2, p2, scalar)
    assert sim2.shape == (B2, C2) and proto_out.shape == (C2, D2)
    assert jnp.allclose(sim2, ref2, atol=1e-4, rtol=1e-4), "mismatch vs reference (tiled K)"

    print("KERNEL_OK")
</pallas_src>

<mosaic_0001>
module attributes {stable_mosaic.version = 11 : i64} {
  func.func @_cos_classifier_kernel(%arg0: i32, %arg1: i32, %arg2: i32, %arg3: memref<1xf32, #tpu.memory_space<smem>>, %arg4: memref<8x128xf32, #tpu.memory_space<vmem>>, %arg5: memref<128x128xf32, #tpu.memory_space<vmem>>, %arg6: memref<1x128xf32, #tpu.memory_space<vmem>>, %arg7: memref<8x128xf32, #tpu.memory_space<vmem>>, %arg8: memref<8x128xf32, #tpu.memory_space<vmem>>, %arg9: memref<8x1xf32, #tpu.memory_space<vmem>>) attributes {dimension_semantics = [#tpu.dimension_semantics<parallel>, #tpu.dimension_semantics<parallel>, #tpu.dimension_semantics<arbitrary>], iteration_bounds = array<i64: 1, 1, 1>, scalar_prefetch = 0 : i64, scratch_operands = 2 : i64, tpu.core_type = #tpu.core_type<tc>, window_params = [{transform_indices = @transform_0, window_bounds = array<i64: 1>}, {transform_indices = @transform_1, window_bounds = array<i64: 8, 128>}, {transform_indices = @transform_2, window_bounds = array<i64: 128, 128>}, {transform_indices = @transform_3, window_bounds = array<i64: 1, 128>}, {transform_indices = @transform_4, window_bounds = array<i64: 8, 128>}]} {
    %c0_i32 = arith.constant 0 : i32
    %0 = arith.cmpi eq, %arg2, %c0_i32 : i32
    %1 = arith.extui %0 : i1 to i32
    %c0_i32_0 = arith.constant 0 : i32
    %2 = arith.cmpi ne, %1, %c0_i32_0 : i32
    scf.if %2 {
      %cst_15 = arith.constant 0.000000e+00 : f32
      %18 = vector.broadcast %cst_15 : f32 to vector<8x128xf32>
      %c0_16 = arith.constant 0 : index
      %c0_17 = arith.constant 0 : index
      %19 = vector.load %arg8[%c0_16, %c0_17] : memref<8x128xf32, #tpu.memory_space<vmem>>, vector<8x128xf32>
      tpu.vector_store %arg8[%c0_16, %c0_17], %18 {strides = array<i32>} : memref<8x128xf32, #tpu.memory_space<vmem>>, vector<8x128xf32>,
      %cst_18 = arith.constant 0.000000e+00 : f32
      %20 = vector.broadcast %cst_18 : f32 to vector<8x1xf32>
      %c0_19 = arith.constant 0 : index
      %c0_20 = arith.constant 0 : index
      %21 = vector.load %arg9[%c0_19, %c0_20] : memref<8x1xf32, #tpu.memory_space<vmem>>, vector<8x1xf32>
      tpu.vector_store %arg9[%c0_19, %c0_20], %20 {strides = array<i32>} : memref<8x1xf32, #tpu.memory_space<vmem>>, vector<8x1xf32>,
    } else {
    }
    %c0 = arith.constant 0 : index
    %c0_1 = arith.constant 0 : index
    %3 = vector.load %arg4[%c0, %c0_1] : memref<8x128xf32, #tpu.memory_space<vmem>>, vector<8x128xf32>
    %c0_2 = arith.constant 0 : index
    %c0_3 = arith.constant 0 : index
    %4 = vector.load %arg8[%c0_2, %c0_3] : memref<8x128xf32, #tpu.memory_space<vmem>>, vector<8x128xf32>
    %c0_4 = arith.constant 0 : index
    %c0_5 = arith.constant 0 : index
    %5 = vector.load %arg5[%c0_4, %c0_5] : memref<128x128xf32, #tpu.memory_space<vmem>>, vector<128x128xf32>
    %cst = arith.constant dense<0.000000e+00> : vector<8x128xf32>
    %6 = tpu.matmul %3, %5, %cst {dimension_numbers = #tpu.dot_dimension_numbers<[1], [0], [0], [1], [0, 0, 1, 1], [], []>} : vector<8x128xf32>, vector<128x128xf32>, vector<8x128xf32> -> vector<8x128xf32>
    %7 = arith.addf %4, %6 : vector<8x128xf32>
    %c0_6 = arith.constant 0 : index
    %c0_7 = arith.constant 0 : index
    %8 = vector.load %arg8[%c0_6, %c0_7] : memref<8x128xf32, #tpu.memory_space<vmem>>, vector<8x128xf32>
    tpu.vector_store %arg8[%c0_6, %c0_7], %7 {strides = array<i32>} : memref<8x128xf32, #tpu.memory_space<vmem>>, vector<8x128xf32>,
    %c0_8 = arith.constant 0 : index
    %c0_9 = arith.constant 0 : index
    %9 = vector.load %arg9[%c0_8, %c0_9] : memref<8x1xf32, #tpu.memory_space<vmem>>, vector<8x1xf32>
    %10 = arith.mulf %3, %3 : vector<8x128xf32>
    %cst_10 = arith.constant dense<0.000000e+00> : vector<8xf32>
    %11 = vector.multi_reduction <add>, %10, %cst_10 [1] : vector<8x128xf32> to vector<8xf32>
    %12 = vector.shape_cast %11 : vector<8xf32> to vector<8x1xf32>
    %13 = arith.addf %9, %12 : vector<8x1xf32>
    %c0_11 = arith.constant 0 : index
    %c0_12 = arith.constant 0 : index
    %14 = vector.load %arg9[%c0_11, %c0_12] : memref<8x1xf32, #tpu.memory_space<vmem>>, vector<8x1xf32>
    tpu.vector_store %arg9[%c0_11, %c0_12], %13 {strides = array<i32>} : memref<8x1xf32, #tpu.memory_space<vmem>>, vector<8x1xf32>,
    %c0_i32_13 = arith.constant 0 : i32
    %15 = arith.cmpi eq, %arg2, %c0_i32_13 : i32
    %16 = arith.extui %15 : i1 to i32
    %c0_i32_14 = arith.constant 0 : i32
    %17 = arith.cmpi ne, %16, %c0_i32_14 : i32
    scf.if %17 {
      %c0_15 = arith.constant 0 : index
      %c0_16 = arith.constant 0 : index
      %18 = vector.load %arg9[%c0_15, %c0_16] : memref<8x1xf32, #tpu.memory_space<vmem>>, vector<8x1xf32>
      %c0_17 = arith.constant 0 : index
      %c0_18 = arith.constant 0 : index
      %19 = vector.load %arg6[%c0_17, %c0_18] : memref<1x128xf32, #tpu.memory_space<vmem>>, vector<1x128xf32>
      %20 = vector.broadcast %18 : vector<8x1xf32> to vector<8x128xf32>
      %21 = vector.broadcast %19 : vector<1x128xf32> to vector<8x128xf32>
      %22 = arith.mulf %20, %21 : vector<8x128xf32>
      %cst_19 = arith.constant 9.99999993E-9 : f32
      %cst_20 = arith.constant 9.99999993E-9 : f32
      %23 = arith.mulf %cst_19, %cst_20 : f32
      %24 = vector.broadcast %23 : f32 to vector<8x128xf32>
      %25 = arith.maximumf %22, %24 : vector<8x128xf32>
      %c0_21 = arith.constant 0 : index
      %26 = memref.load %arg3[%c0_21] : memref<1xf32, #tpu.memory_space<smem>>
      %cst_22 = arith.constant 1.000000e+01 : f32
      %27 = arith.mulf %26, %cst_22 : f32
      %c0_23 = arith.constant 0 : index
      %c0_24 = arith.constant 0 : index
      %28 = vector.load %arg8[%c0_23, %c0_24] : memref<8x128xf32, #tpu.memory_space<vmem>>, vector<8x128xf32>
      %29 = math.rsqrt %25 : vector<8x128xf32>
      %30 = arith.mulf %28, %29 : vector<8x128xf32>
      %31 = vector.broadcast %27 : f32 to vector<8x128xf32>
      %32 = arith.mulf %30, %31 : vector<8x128xf32>
      %c0_25 = arith.constant 0 : index
      %c0_26 = arith.constant 0 : index
      %33 = vector.load %arg7[%c0_25, %c0_26] : memref<8x128xf32, #tpu.memory_space<vmem>>, vector<8x128xf32>
      tpu.vector_store %arg7[%c0_25, %c0_26], %32 {strides = array<i32>} : memref<8x128xf32, #tpu.memory_space<vmem>>, vector<8x128xf32>,
    } else {
    }
    return
  }
  func.func @transform_0(%arg0: i32, %arg1: i32, %arg2: i32) -> i32 {
    %c0_i32 = arith.constant 0 : i32
    %c0_i32_0 = arith.constant 0 : i32
    return %c0_i32 : i32
  }
  func.func @transform_1(%arg0: i32, %arg1: i32, %arg2: i32) -> (i32, i32) {
    %c0_i32 = arith.constant 0 : i32
    return %arg0, %arg2 : i32, i32
  }
  func.func @transform_2(%arg0: i32, %arg1: i32, %arg2: i32) -> (i32, i32) {
    %c0_i32 = arith.constant 0 : i32
    return %arg2, %arg1 : i32, i32
  }
  func.func @transform_3(%arg0: i32, %arg1: i32, %arg2: i32) -> (i32, i32) {
    %c0_i32 = arith.constant 0 : i32
    %c0_i32_0 = arith.constant 0 : i32
    return %c0_i32, %arg1 : i32, i32
  }
  func.func @transform_4(%arg0: i32, %arg1: i32, %arg2: i32) -> (i32, i32) {
    %c0_i32 = arith.constant 0 : i32
    return %arg0, %arg1 : i32, i32
  }
}

</mosaic_0001>

<bundles_post_ra>
// kernel: cos_classifier.1
= control target key start
LH: loop header
LB: loop body
LE: loop exit
PB: predicated region body
PF: predicated region fallthrough
CT: control target
= control target key end

     0   :  { %s244_s0 = inlined_call_operand.<no memory space> [shape: f32[1], index: 0, kind: input, shape index: {}]   ;;  %s245_s1 = inlined_call_operand.vmem [shape: f32[8,128], index: 1, kind: input, shape index: {}]   ;;  %s246_s2 = inlined_call_operand.vmem [shape: f32[128,128], index: 2, kind: input, shape index: {}]   ;;  %s247_s3 = inlined_call_operand.vmem [shape: f32[1,128], index: 3, kind: input, shape index: {}]   ;;  %s248_s4 = inlined_call_operand.hbm [shape: f32[8,128], index: 4, kind: output, shape index: {}]  }
   0x1   :  { %v26_v0 = vld [vmem:[%s245_s1] sm:$0xff]  ;;  %v43_v1 = vld [vmem:[%s246_s2 + $0x78] sm:$0xff]  ;;  %v42_v2 = vld [vmem:[%s246_s2 + $0x70] sm:$0xff] }
   0x2   :  { %v67_v3 = vmul.f32 %v26_v0, %v26_v0  ;;  %44 = vmatpush.msra.mxu0 %v43_v1  ;;  %v41_v4 = vld [vmem:[%s246_s2 + $0x68] sm:$0xff] }
   0x3   :  { %10 = vsyncpa [#allocation6], 0  ;;  %v40_v5 = vld [vmem:[%s246_s2 + $0x60] sm:$0xff]  ;;  %v39_v6 = vld [vmem:[%s246_s2 + $0x58] sm:$0xff]  ;;  %vm24_vm0 = vcmask 7168   ;;  %v154_v7 = vmov 0.0  }
   0x4   :  { %68 = vadd.xlane.f32.xlu0 %v67_v3  ;;  %45 = vmatpush.msra.mxu0 %v42_v2  ;;  %25 = vst.msk [vmem:[#allocation3] sm:$0xff] %vm24_vm0, %v154_v7  ;;  %v38_v8 = vld [vmem:[%s246_s2 + $0x50] sm:$0xff]  ;;  %v37_v9 = vld [vmem:[%s246_s2 + $0x48] sm:$0xff]  ;;  %v36_v10 = vld [vmem:[%s246_s2 + $0x40] sm:$0xff]  ;;  %v155_v12 = vmov 0   ;;  %s89_s1 = smul.f32 10.0, %s244_s0 }
   0x5   :  { %v35_v11 = vld [vmem:[%s246_s2 + $0x38] sm:$0xff]  ;;  %124 = vset.pattern.permute.xlu0 %v155_v12  ;;  %v34_v13 = vld [vmem:[%s246_s2 + $0x30] sm:$0xff]  ;;  %v33_v14 = vld [vmem:[%s246_s2 + $0x28] sm:$0xff]  ;;  %s112_s28 = sshll.u32 %s248_s4, 4  ;;  %s113_s28 = int_to_ptr.hbm [resolvable:$true] %s112_s28 }
   0x6   :  { %46 = vmatpush.msra.mxu0 %v41_v4  ;;  %v32_v15 = vld [vmem:[%s246_s2 + $0x20] sm:$0xff]  ;;  %v31_v16 = vld [vmem:[%s246_s2 + $0x18] sm:$0xff]  ;;  %v30_v17 = vld [vmem:[%s246_s2 + $0x10] sm:$0xff]  ;;  %v102_v36 = vstv %s89_s1 }
   0x7   :  { %v29_v18 = vld [vmem:[%s246_s2 + $0x8] sm:$0xff]  ;;  %v28_v19 = vld [vmem:[%s246_s2] sm:$0xff] }
   0x8   :  { %47 = vmatpush.msra.mxu0 %v40_v5  ;;  %v125_v24 = vld [vmem:[%s247_s3] ss:$0 sm:$0xff]  ;;  %s156_s3 = smov [#allocation5]  }
   0x9   :  { %s110_s25 = sshll.u32 %s156_s3, 4  ;;  %s111_s25 = int_to_ptr.vmem [resolvable:$true] %s110_s25 }
   0xa   :  { %48 = vmatpush.msra.mxu0 %v39_v6 }
   0xb   :  { %v66_v20 = vld [vmem:[#allocation3] sm:$0xff] }
   0xc   :  { %49 = vmatpush.msra.mxu0 %v38_v8 }
   0xe   :  { %50 = vmatpush.msra.mxu0 %v37_v9 }
  0x10   :  { %51 = vmatpush.msra.mxu0 %v36_v10 }
  0x12   :  { %52 = vmatpush.msra.mxu0 %v35_v11 }
  0x14   :  { %53 = vmatpush.msra.mxu0 %v34_v13 }
  0x16   :  { %54 = vmatpush.msra.mxu0 %v33_v14 }
  0x18   :  { %55 = vmatpush.msra.mxu0 %v32_v15 }
  0x1a   :  { %56 = vmatpush.msra.mxu0 %v31_v16 }
  0x1c   :  { %57 = vmatpush.msra.mxu0 %v30_v17 }
  0x1e   :  { %58 = vmatpush.msra.mxu0 %v29_v18 }
  0x20   :  { %59 = vmatpush.msra.mxu0 %v28_v19 }
  0x21   :  { %60 = vmatmul.f32.vlgmr.msra.gmra.mxu0 %v26_v0 }
  0x77   :  { %v69_v21 = vpop.xlane.xlu0 %68 }
  0x78   :  { %v70_v22 = vadd.f32 %v69_v21, %v66_v20 }
  0x7a   :  { %72 = vst.msk [vmem:[#allocation3] sm:$0xff] %vm24_vm0, %v70_v22 }
  0x81   :  { %v76_v23 = vld [vmem:[#allocation3] sm:$0xff] }
  0x82   :  { %80 = vperm.xlu0 %124, %v76_v23  }
  0x9e   :  { %v61_v33 = vpop.f32.mrf.mxu0 }
  0xf4   :  { %v81_v25 = vpop.permute.xlu0 %80 }
  0xf5   :  { %v86_v26 = vmul.f32 %v125_v24, %v81_v25 }
  0xf7   :  { %v87_v27 = vmax.f32 %v86_v26, 1e-16 }
  0xf9   :  { %126 = vrsqrt.f32 %v87_v27  ;;  %vm97_vm2 = vweird.f32 %v87_v27 }
  0xff   :  { %v127_v28 = vpop.eup %126 }
 0x100   :  { %v92_v29 = vmul.f32 %v127_v28, %v87_v27  ;;  %vm98_vm1 = vweird.f32 %v127_v28 }
 0x101   :  { %vm99_vm3 = vmor %vm97_vm2, %vm98_vm1 }
 0x102   :  { %v93_v30 = vmul.f32 %v127_v28, %v92_v29 }
 0x104   :  { %v94_v31 = vmul.f32 0.5, %v93_v30 }
 0x106   :  { %v95_v32 = vsub.f32 1.5, %v94_v31 }
 0x108   :  { %v96_v34 = vmul.f32 %v127_v28, %v95_v32 }
 0x10a   :  { %v100_v35 = vsel %vm99_vm3, %v127_v28, %v96_v34 }
 0x10b   :  { %v101_v37 = vmul.f32 %v100_v35, %v61_v33 }
 0x10d   :  { %v103_v38 = vmul.f32 %v102_v36, %v101_v37 }
 0x10f   :  { %104 = vst [vmem:[#allocation5] sm:$0xff] %v103_v38 }
 0x110   :  { %115 = dma.vmem_to_hbm [thread:$0]  %s111_s25, 128, %s113_s28, [#allocation6]  }
 0x111   :  { %152 = dma.done.wait [#allocation6], 128  }
 0x112   :  { %153 = vsyncadd [#allocation6], 4294967168 }
 0x113   :  { %120 = vsyncpa [#allocation6], 1 }

</bundles_post_ra>
